<compile_context>
chip_gen: v6e
topology: v6e:2x2x1
jax: 0.10.0
libtpu: 0.0.40
codegen_flags: <defaults>
</compile_context>

<pallas_src>
import jax
import jax.numpy as jnp
from jax.experimental import pallas as pl
from jax.experimental.pallas import tpu as pltpu

INPUT_SIZE = 28 * 28
HIDDEN_SIZE = 50
OUTPUT_SIZE = 10

HIDDEN_PAD = 128    # lane-friendly hidden width (real = 50, rest zero)
OUTPUT_PAD = 128    # lane-dense output width (real = 10, rest masked via -1e30 bias)
NEG_BIG = -1e30     # pad-lane logit -> exp() underflows to exactly 0 in f32
DEFAULT_TILE_B = 2048


def _round_up(n, m):
    return ((n + m - 1) // m) * m


def mlp_kernel(x_ref, w1_ref, b1_ref, w2_ref, b2_ref, o_ref):
    # fc1: in-kernel bf16 cast of the f32 x tile (free on the VPU), bf16 w1,
    # f32 MXU accumulation; bias add / ReLU in f32.
    x_bf = x_ref[...].astype(jnp.bfloat16)
    h = jnp.dot(x_bf, w1_ref[...], preferred_element_type=jnp.float32)
    h = jnp.maximum(h + b1_ref[...], 0.0)
    # fc2: bf16 x bf16 MXU matmul (K=128, N=128), f32 accumulate, f32 bias.
    logits = jnp.dot(h.astype(jnp.bfloat16), w2_ref[...],
                     preferred_element_type=jnp.float32) + b2_ref[...]
    # Numerically stable softmax over the 128 lane-dense output lanes.
    # Pad lanes carry -1e30 logits so they contribute exactly 0 to the sum.
    m = jnp.max(logits, axis=-1, keepdims=True)
    e = jnp.exp(logits - m)
    denom = jnp.sum(e, axis=-1, keepdims=True)
    o_ref[...] = (e * pl.reciprocal(denom, approx=True)).astype(o_ref.dtype)


def prepare_params(w1, b1, w2, b2):
    """One-time parameter prep (hoisted out of the forward pass).

    Zero-pad to lane-friendly widths and pre-cast matmul weights to bf16.
    Zero pad columns/rows are exact no-ops through fc1/ReLU/fc2; pad output-bias
    lanes are NEG_BIG so their softmax contribution is exactly zero.
    """
    in_features, hidden = w1.shape
    out_features = w2.shape[1]
    w1p = jnp.zeros((in_features, HIDDEN_PAD), jnp.float32).at[:, :hidden].set(w1)
    b1p = jnp.zeros((1, HIDDEN_PAD), jnp.float32).at[:, :hidden].set(
        b1.reshape(1, -1))
    w2p = jnp.zeros((HIDDEN_PAD, OUTPUT_PAD), jnp.float32).at[
        :hidden, :out_features].set(w2)
    b2p = jnp.full((1, OUTPUT_PAD), NEG_BIG, jnp.float32).at[
        :, :out_features].set(b2.reshape(1, -1))
    return (w1p.astype(jnp.bfloat16), b1p, w2p.astype(jnp.bfloat16), b2p)


def mlp_forward(x, params, *, tile_b=DEFAULT_TILE_B, out_dtype=jnp.float32,
                trim=True):
    """Fused MLP forward. `params` comes from prepare_params().

    trim=False returns the padded (B, 128) buffer (saves a full HBM pass; real
    probabilities live in the first OUTPUT_SIZE lanes). out_dtype=jnp.bfloat16
    halves output writeback if the consumer tolerates bf16 probabilities.
    """
    w1_bf, b1p, w2_bf, b2p = params
    B = x.shape[0]
    x2d = x.reshape(B, -1).astype(jnp.float32)  # flatten like x.view(B, -1)
    in_features = x2d.shape[1]
    assert in_features == w1_bf.shape[0]

    # Batch tiling: large tiles to amortize per-step overhead, 8-aligned sublanes,
    # and at least 2 grid steps when the batch allows it (v7x megacore sharding).
    # Ragged last block is handled by Pallas masking -- no jnp.pad copy of x.
    tile_b = max(8, min(tile_b, _round_up(pl.cdiv(B, 2), 8), _round_up(B, 8)))
    grid = (pl.cdiv(B, tile_b),)

    # NOTE: weight/bias specs (constant index_map) don't need double-buffering;
    # pipeline_mode=pl.Buffered(1) would free ~300 KiB of VMEM if tile_b is pushed
    # toward the v7x ceiling -- not needed at these sizes.
    out = pl.pallas_call(
        mlp_kernel,
        out_shape=jax.ShapeDtypeStruct((B, OUTPUT_PAD), out_dtype),
        grid=grid,
        in_specs=[
            pl.BlockSpec((tile_b, in_features), lambda i: (i, 0)),      # x tile (streamed, f32)
            pl.BlockSpec((in_features, HIDDEN_PAD), lambda i: (0, 0)),  # w1 (resident, bf16)
            pl.BlockSpec((1, HIDDEN_PAD), lambda i: (0, 0)),            # b1 (resident, f32)
            pl.BlockSpec((HIDDEN_PAD, OUTPUT_PAD), lambda i: (0, 0)),   # w2 (resident, bf16)
            pl.BlockSpec((1, OUTPUT_PAD), lambda i: (0, 0)),            # b2 (resident, f32)
        ],
        out_specs=pl.BlockSpec((tile_b, OUTPUT_PAD), lambda i: (i, 0)),  # lane-dense out
        compiler_params=pltpu.CompilerParams(
            dimension_semantics=("parallel",),   # megacore-shardable batch axis
            vmem_limit_bytes=48 * 1024 * 1024,   # f32 x tiles at tile_b=2048 on v5e
        ),
    )(x2d, w1_bf, b1p, w2_bf, b2p)

    if trim:
        return out[:, :OUTPUT_SIZE]
    return out


def init_params(key):
    # Deterministic init mimicking nn.Linear's uniform(-1/sqrt(fan_in), 1/sqrt(fan_in)).
    k1, k2, k3, k4 = jax.random.split(key, 4)
    bound1 = 1.0 / jnp.sqrt(INPUT_SIZE)
    bound2 = 1.0 / jnp.sqrt(HIDDEN_SIZE)
    w1 = jax.random.uniform(k1, (INPUT_SIZE, HIDDEN_SIZE), jnp.float32, -bound1, bound1)
    b1 = jax.random.uniform(k2, (1, HIDDEN_SIZE), jnp.float32, -bound1, bound1)
    w2 = jax.random.uniform(k3, (HIDDEN_SIZE, OUTPUT_SIZE), jnp.float32, -bound2, bound2)
    b2 = jax.random.uniform(k4, (1, OUTPUT_SIZE), jnp.float32, -bound2, bound2)
    return w1, b1, w2, b2


def _reference(x, w1, b1, w2, b2):
    # Pure-JAX reference with the same bf16 MXU-operand casts as the kernel.
    x2d = x.reshape(x.shape[0], -1)
    h = jnp.dot(x2d.astype(jnp.bfloat16), w1.astype(jnp.bfloat16),
                preferred_element_type=jnp.float32) + b1
    h = jnp.maximum(h, 0.0)
    logits = jnp.dot(h.astype(jnp.bfloat16), w2.astype(jnp.bfloat16),
                     preferred_element_type=jnp.float32) + b2
    return jax.nn.softmax(logits, axis=1)


if __name__ == "__main__":
    key = jax.random.PRNGKey(0)
    kx, kx2, kp = jax.random.split(key, 3)

    w1, b1, w2, b2 = init_params(kp)
    params = prepare_params(w1, b1, w2, b2)  # one-time prep (padding + bf16 cast)

    # --- small MNIST-like NCHW batch, default tiling ---
    batch = 8
    x = jax.random.normal(kx, (batch, 1, 28, 28), dtype=jnp.float32)
    out = jax.block_until_ready(mlp_forward(x, params))
    ref = _reference(x, w1, b1, w2, b2)
    assert out.shape == (batch, OUTPUT_SIZE)
    assert jnp.allclose(out, ref, atol=1e-2, rtol=1e-2)
    assert jnp.allclose(jnp.sum(out, axis=1), 1.0, atol=1e-2)

    # --- ragged batch (not a multiple of the tile) exercises Pallas last-block masking ---
    batch2 = 20
    x2 = jax.random.normal(kx2, (batch2, 1, 28, 28), dtype=jnp.float32)
    out2 = jax.block_until_ready(mlp_forward(x2, params, tile_b=8))
    ref2 = _reference(x2, w1, b1, w2, b2)
    assert out2.shape == (batch2, OUTPUT_SIZE)
    assert jnp.allclose(out2, ref2, atol=1e-2, rtol=1e-2)
    assert jnp.allclose(jnp.sum(out2, axis=1), 1.0, atol=1e-2)

    print("KERNEL_OK")
</pallas_src>

<mosaic_0001>
module attributes {stable_mosaic.version = 11 : i64} {
  func.func @mlp_kernel(%arg0: i32, %arg1: memref<8x784xf32, #tpu.memory_space<vmem>>, %arg2: memref<784x128xbf16, #tpu.memory_space<vmem>>, %arg3: memref<1x128xf32, #tpu.memory_space<vmem>>, %arg4: memref<128x128xbf16, #tpu.memory_space<vmem>>, %arg5: memref<1x128xf32, #tpu.memory_space<vmem>>, %arg6: memref<8x128xf32, #tpu.memory_space<vmem>>) attributes {dimension_semantics = [#tpu.dimension_semantics<parallel>], iteration_bounds = array<i64: 1>, scalar_prefetch = 0 : i64, scratch_operands = 0 : i64, tpu.core_type = #tpu.core_type<tc>, window_params = [{transform_indices = @transform_0, window_bounds = array<i64: 8, 784>}, {pipeline_mode = #tpu.pipeline_mode<synchronous>, transform_indices = @transform_1, window_bounds = array<i64: 784, 128>}, {pipeline_mode = #tpu.pipeline_mode<synchronous>, transform_indices = @transform_2, window_bounds = array<i64: 1, 128>}, {pipeline_mode = #tpu.pipeline_mode<synchronous>, transform_indices = @transform_3, window_bounds = array<i64: 128, 128>}, {pipeline_mode = #tpu.pipeline_mode<synchronous>, transform_indices = @transform_4, window_bounds = array<i64: 1, 128>}, {transform_indices = @transform_5, window_bounds = array<i64: 8, 128>}]} {
    %c0 = arith.constant 0 : index
    %c0_0 = arith.constant 0 : index
    %0 = vector.load %arg1[%c0, %c0_0] : memref<8x784xf32, #tpu.memory_space<vmem>>, vector<8x784xf32>
    %1 = arith.truncf %0 : vector<8x784xf32> to vector<8x784xbf16>
    %c0_1 = arith.constant 0 : index
    %c0_2 = arith.constant 0 : index
    %2 = vector.load %arg2[%c0_1, %c0_2] : memref<784x128xbf16, #tpu.memory_space<vmem>>, vector<784x128xbf16>
    %cst = arith.constant dense<0.000000e+00> : vector<8x128xf32>
    %3 = tpu.matmul %1, %2, %cst {dimension_numbers = #tpu.dot_dimension_numbers<[1], [0], [0], [1], [0, 0, 1, 1], [], []>} : vector<8x784xbf16>, vector<784x128xbf16>, vector<8x128xf32> -> vector<8x128xf32>
    %c0_3 = arith.constant 0 : index
    %c0_4 = arith.constant 0 : index
    %4 = vector.load %arg3[%c0_3, %c0_4] : memref<1x128xf32, #tpu.memory_space<vmem>>, vector<1x128xf32>
    %5 = vector.broadcast %4 : vector<1x128xf32> to vector<8x128xf32>
    %6 = arith.addf %3, %5 : vector<8x128xf32>
    %cst_5 = arith.constant 0.000000e+00 : f32
    %7 = vector.broadcast %cst_5 : f32 to vector<8x128xf32>
    %8 = arith.maximumf %6, %7 : vector<8x128xf32>
    %9 = arith.truncf %8 : vector<8x128xf32> to vector<8x128xbf16>
    %c0_6 = arith.constant 0 : index
    %c0_7 = arith.constant 0 : index
    %10 = vector.load %arg4[%c0_6, %c0_7] : memref<128x128xbf16, #tpu.memory_space<vmem>>, vector<128x128xbf16>
    %cst_8 = arith.constant dense<0.000000e+00> : vector<8x128xf32>
    %11 = tpu.matmul %9, %10, %cst_8 {dimension_numbers = #tpu.dot_dimension_numbers<[1], [0], [0], [1], [0, 0, 1, 1], [], []>} : vector<8x128xbf16>, vector<128x128xbf16>, vector<8x128xf32> -> vector<8x128xf32>
    %c0_9 = arith.constant 0 : index
    %c0_10 = arith.constant 0 : index
    %12 = vector.load %arg5[%c0_9, %c0_10] : memref<1x128xf32, #tpu.memory_space<vmem>>, vector<1x128xf32>
    %13 = vector.broadcast %12 : vector<1x128xf32> to vector<8x128xf32>
    %14 = arith.addf %11, %13 : vector<8x128xf32>
    %cst_11 = arith.constant dense<0xFF800000> : vector<8xf32>
    %15 = vector.multi_reduction <maximumf>, %14, %cst_11 [1] : vector<8x128xf32> to vector<8xf32>
    %16 = vector.shape_cast %15 : vector<8xf32> to vector<8x1xf32>
    %17 = vector.broadcast %16 : vector<8x1xf32> to vector<8x128xf32>
    %18 = arith.subf %14, %17 : vector<8x128xf32>
    %19 = math.exp %18 : vector<8x128xf32>
    %cst_12 = arith.constant dense<0.000000e+00> : vector<8xf32>
    %20 = vector.multi_reduction <add>, %19, %cst_12 [1] : vector<8x128xf32> to vector<8xf32>
    %21 = vector.shape_cast %20 : vector<8xf32> to vector<8x1xf32>
    %22 = tpu.reciprocal %21 {approx = true} : vector<8x1xf32> -> vector<8x1xf32>
    %23 = vector.broadcast %22 : vector<8x1xf32> to vector<8x128xf32>
    %24 = arith.mulf %19, %23 : vector<8x128xf32>
    %c0_13 = arith.constant 0 : index
    %c0_14 = arith.constant 0 : index
    %25 = vector.load %arg6[%c0_13, %c0_14] : memref<8x128xf32, #tpu.memory_space<vmem>>, vector<8x128xf32>
    tpu.vector_store %arg6[%c0_13, %c0_14], %24 {strides = array<i32>} : memref<8x128xf32, #tpu.memory_space<vmem>>, vector<8x128xf32>,
    return
  }
  func.func @transform_0(%arg0: i32) -> (i32, i32) {
    %c0_i32 = arith.constant 0 : i32
    %c0_i32_0 = arith.constant 0 : i32
    return %arg0, %c0_i32 : i32, i32
  }
  func.func @transform_1(%arg0: i32) -> (i32, i32) {
    %c0_i32 = arith.constant 0 : i32
    %c0_i32_0 = arith.constant 0 : i32
    %c0_i32_1 = arith.constant 0 : i32
    return %c0_i32, %c0_i32_0 : i32, i32
  }
  func.func @transform_2(%arg0: i32) -> (i32, i32) {
    %c0_i32 = arith.constant 0 : i32
    %c0_i32_0 = arith.constant 0 : i32
    %c0_i32_1 = arith.constant 0 : i32
    return %c0_i32, %c0_i32_0 : i32, i32
  }
  func.func @transform_3(%arg0: i32) -> (i32, i32) {
    %c0_i32 = arith.constant 0 : i32
    %c0_i32_0 = arith.constant 0 : i32
    %c0_i32_1 = arith.constant 0 : i32
    return %c0_i32, %c0_i32_0 : i32, i32
  }
  func.func @transform_4(%arg0: i32) -> (i32, i32) {
    %c0_i32 = arith.constant 0 : i32
    %c0_i32_0 = arith.constant 0 : i32
    %c0_i32_1 = arith.constant 0 : i32
    return %c0_i32, %c0_i32_0 : i32, i32
  }
  func.func @transform_5(%arg0: i32) -> (i32, i32) {
    %c0_i32 = arith.constant 0 : i32
    %c0_i32_0 = arith.constant 0 : i32
    return %arg0, %c0_i32 : i32, i32
  }
}

</mosaic_0001>

<bundles_post_ra>
// kernel: tpu_custom_call.1
= control target key start
LH: loop header
LB: loop body
LE: loop exit
PB: predicated region body
PF: predicated region fallthrough
CT: control target
= control target key end

     0   :  { %10 = vsyncpa [#allocation3], 0  ;;  %s1164_s0 = inlined_call_operand.hbm [shape: f32[8,784], index: 0, kind: input, shape index: {}]   ;;  %s1165_s1 = inlined_call_operand.hbm [shape: bf16[784,128], index: 1, kind: input, shape index: {}]   ;;  %s1166_s2 = inlined_call_operand.vmem [shape: f32[1,128], index: 2, kind: input, shape index: {}]   ;;  %s1167_s3 = inlined_call_operand.hbm [shape: bf16[128,128], index: 3, kind: input, shape index: {}]   ;;  %s1168_s4 = inlined_call_operand.vmem [shape: f32[1,128], index: 4, kind: input, shape index: {}]   ;;  %s1169_s5 = inlined_call_operand.hbm [shape: f32[8,128], index: 5, kind: output, shape index: {}]  }
   0x1   :  { %11 = vsyncpa [#allocation6], 0 }
   0x2   :  { %12 = vsyncpa [#allocation4], 0  ;;  %s1095_s18 = smov [#allocation5]  }
   0x3   :  { %s28_s19 = sshll.u32 %s1095_s18, 4  ;;  %s29_s19 = int_to_ptr.vmem [resolvable:$true] %s28_s19 }
   0x4   :  { %s1017_s20 = scalar_lea.vmem %s29_s19, 6272  ;;  %p1022_p1 = scmp.lt.s32.totalorder %s29_s19, %s29_s19 }
   0x5   :  { %p1018_p0 = scmp.ne.s32.totalorder %s29_s19, %s1017_s20  ;;  %p1023_p2 = scmp.lt.s32.totalorder %s1017_s20, %s1017_s20 }
   0x7   :  { %p1024_p3 = por %p1023_p2, %p1022_p1 }
   0x9   :  { %p1025_p4 = pnand %p1024_p3, %p1018_p0 }
   0xb   :  { %1028 = shalt.err (!%p1025_p4)
}
   0xc   :  { %s1096_s21 = smov 64   ;;  %s1097_s22 = smov 4  }
   0xd   :  { %34 = dma.hbm_to_vmem [thread:$0]  %s1165_s1, 6272, %s29_s19, [#allocation6], %s1096_s21, %s1096_s21, %s1097_s22  }
   0xe   :  { %s1098_s25 = smov [#allocation2]   ;;  %s1099_s27 = smov [#allocation7]  }
   0xf   :  { %s19_s26 = sshll.u32 %s1098_s25, 4  ;;  %s42_s28 = sshll.u32 %s1099_s27, 4  ;;  %s20_s26 = int_to_ptr.vmem [resolvable:$true] %s19_s26  ;;  %s43_s28 = int_to_ptr.vmem [resolvable:$true] %s42_s28 }
  0x10   :  { %s1037_s29 = scalar_lea.vmem %s20_s26, 896  ;;  %p1042_p6 = scmp.lt.s32.totalorder %s20_s26, %s20_s26 }
  0x11   :  { %p1038_p5 = scmp.ne.s32.totalorder %s20_s26, %s1037_s29  ;;  %p1043_p7 = scmp.lt.s32.totalorder %s1037_s29, %s1037_s29 }
  0x13   :  { %p1044_p8 = por %p1043_p7, %p1042_p6 }
  0x15   :  { %p1045_p9 = pnand %p1044_p8, %p1038_p5 }
  0x17   :  { %1048 = shalt.err (!%p1045_p9)
}
  0x18   :  { %22 = dma.hbm_to_vmem [thread:$0]  %s1164_s0, 896, %s20_s26, [#allocation3]  }
  0x19   :  { %s1057_s7 = scalar_lea.vmem %s43_s28, 1024  ;;  %p1062_p11 = scmp.lt.s32.totalorder %s43_s28, %s43_s28 }
  0x1a   :  { %p1058_p10 = scmp.ne.s32.totalorder %s43_s28, %s1057_s7  ;;  %p1063_p12 = scmp.lt.s32.totalorder %s1057_s7, %s1057_s7 }
  0x1c   :  { %p1064_p13 = por %p1063_p12, %p1062_p11 }
  0x1e   :  { %p1065_p0 = pnand %p1064_p13, %p1058_p10 }
  0x20   :  { %1068 = shalt.err (!%p1065_p0)
}
  0x21   :  { %48 = dma.hbm_to_vmem [thread:$0]  %s1167_s3, 1024, %s43_s28, [#allocation6], %s1096_s21, %s1096_s21, %s1097_s22  }
  0x22   :  { %1089 = dma.done.wait [#allocation3], 896  }
  0x23   :  { %1090 = vsyncadd [#allocation3], 4294966400 }
  0x24   :  { %1091 = dma.done.wait [#allocation6], 7296  }
  0x25   :  { %1092 = vsyncadd [#allocation6], 4294960000  ;;  %v948_v0 = vld [vmem:[#allocation5 + $0x78] sm:$0xff]   ;;  %v952_v4 = vld [vmem:[#allocation5 + $0x70] sm:$0xff]   ;;  %v1100_v44 = vmov 0.0   ;;  %vm1101_vm0 = vmmov 0  }
  0x26   :  { %v949_v1 = vld [vmem:[#allocation5 + $0x38] sm:$0xff]   ;;  %837 = vmatprep.subr.bf16.mxu0 %v948_v0  ;;  %v953_v5 = vld [vmem:[#allocation5 + $0x30] sm:$0xff]   ;;  %v956_v8 = vld [vmem:[#allocation5 + $0x68] sm:$0xff]   ;;  %vm474_vm1 = vcmask 130048  }
  0x27   :  { %v950_v2 = vld [vmem:[#allocation5 + $0xf8] sm:$0xff]   ;;  %838 = vmatpush3.bf16.msra.mxu0 %v949_v1  ;;  %v954_v6 = vld [vmem:[#allocation5 + $0xf0] sm:$0xff]   ;;  %v957_v9 = vld [vmem:[#allocation5 + $0x28] sm:$0xff]  }
  0x28   :  { %v951_v3 = vld [vmem:[#allocation5 + $0xb8] sm:$0xff]   ;;  %859 = vmatprep.subr.bf16.mxu1 %v950_v2  ;;  %839 = vmatprep.subr.bf16.mxu0 %v952_v4  ;;  %v955_v7 = vld [vmem:[#allocation5 + $0xb0] sm:$0xff]   ;;  %v958_v10 = vld [vmem:[#allocation5 + $0xe8] sm:$0xff]  }
  0x29   :  { %860 = vmatpush3.bf16.msra.mxu1 %v951_v3  ;;  %v959_v11 = vld [vmem:[#allocation5 + $0xa8] sm:$0xff]   ;;  %v960_v12 = vld [vmem:[#allocation5 + $0x60] sm:$0xff]   ;;  %v964_v16 = vld [vmem:[#allocation5 + $0x58] sm:$0xff]  }
  0x2a   :  { %861 = vmatprep.subr.bf16.mxu1 %v954_v6  ;;  %v961_v13 = vld [vmem:[#allocation5 + $0x20] sm:$0xff]   ;;  %v965_v17 = vld [vmem:[#allocation5 + $0x18] sm:$0xff]   ;;  %v968_v20 = vld [vmem:[#allocation5 + $0x50] sm:$0xff]  }
  0x2b   :  { %840 = vmatpush3.bf16.msra.mxu0 %v953_v5  ;;  %v962_v14 = vld [vmem:[#allocation5 + $0xe0] sm:$0xff]   ;;  %v966_v18 = vld [vmem:[#allocation5 + $0xd8] sm:$0xff]   ;;  %v969_v21 = vld [vmem:[#allocation5 + $0x10] sm:$0xff]  }
  0x2c   :  { %841 = vmatprep.subr.bf16.mxu0 %v956_v8  ;;  %v963_v15 = vld [vmem:[#allocation5 + $0xa0] sm:$0xff]   ;;  %v967_v19 = vld [vmem:[#allocation5 + $0x98] sm:$0xff]   ;;  %v970_v22 = vld [vmem:[#allocation5 + $0xd0] sm:$0xff]  }
  0x2d   :  { %862 = vmatpush3.bf16.msra.mxu1 %v955_v7  ;;  %v971_v23 = vld [vmem:[#allocation5 + $0x90] sm:$0xff]   ;;  %v972_v24 = vld [vmem:[#allocation5 + $0x48] sm:$0xff]   ;;  %v976_v28 = vld [vmem:[#allocation5 + $0x40] sm:$0xff]  }
  0x2e   :  { %863 = vmatprep.subr.bf16.mxu1 %v958_v10  ;;  %v973_v25 = vld [vmem:[#allocation5 + $0x8] sm:$0xff]   ;;  %v977_v29 = vld [vmem:[#allocation5] sm:$0xff]   ;;  %v62_v31 = vld [vmem:[#allocation2 + $0x8] sm:$0xff] }
  0x2f   :  { %842 = vmatpush3.bf16.msra.mxu0 %v957_v9  ;;  %v974_v26 = vld [vmem:[#allocation5 + $0xc8] sm:$0xff]   ;;  %v978_v30 = vld [vmem:[#allocation5 + $0xc0] sm:$0xff]   ;;  %v69_v32 = vpack.c.bf16 %v62_v31, %v62_v31  ;;  %v980_v36 = vld [vmem:[#allocation5 + $0x178] sm:$0xff]  }
  0x30   :  { %843 = vmatprep.subr.bf16.mxu0 %v960_v12  ;;  %v975_v27 = vld [vmem:[#allocation5 + $0x88] sm:$0xff]   ;;  %v979_v33 = vld [vmem:[#allocation5 + $0x80] sm:$0xff]   ;;  %v981_v39 = vld [vmem:[#allocation5 + $0x138] sm:$0xff]  }
  0x31   :  { %864 = vmatpush3.bf16.msra.mxu1 %v959_v11  ;;  %v61_v34 = vld [vmem:[#allocation2] sm:$0xff]  ;;  %v64_v37 = vld [vmem:[#allocation2 + $0x18] sm:$0xff]  ;;  %510 = vmatprep.mubr.bf16.mxu0 %v69_v32  ;;  %v63_v40 = vld [vmem:[#allocation2 + $0x10] sm:$0xff] }
  0x32   :  { %865 = vmatprep.subr.bf16.mxu1 %v962_v14  ;;  %v68_v35 = vpack.c.bf16 %v61_v34, %v61_v34  ;;  %v71_v38 = vpack.c.bf16 %v64_v37, %v64_v37  ;;  %v70_v41 = vpack.c.bf16 %v63_v40, %v63_v40  ;;  %v982_v42 = vld [vmem:[#allocation5 + $0x170] sm:$0xff]   ;;  %v984_v45 = vld [vmem:[#allocation5 + $0x168] sm:$0xff]   ;;  %v986_v47 = vld [vmem:[#allocation5 + $0x160] sm:$0xff]  }
  0x33   :  { %844 = vmatpush3.bf16.msra.mxu0 %v961_v13  ;;  %v983_v43 = vld [vmem:[#allocation5 + $0x130] sm:$0xff]   ;;  %v985_v46 = vld [vmem:[#allocation5 + $0x128] sm:$0xff]   ;;  %v987_v48 = vld [vmem:[#allocation5 + $0x120] sm:$0xff]  }
  0x34   :  { %845 = vmatprep.subr.bf16.mxu0 %v964_v16  ;;  %550 = vmatprep.mubr.bf16.mxu1 %v71_v38  ;;  %v988_v49 = vld [vmem:[#allocation5 + $0x158] sm:$0xff]   ;;  %v990_v51 = vld [vmem:[#allocation5 + $0x150] sm:$0xff]   ;;  %v996_v53 = vld [vmem:[#allocation5 + $0x180] sm:$0xff]  }
  0x35   :  { %866 = vmatpush3.bf16.msra.mxu1 %v963_v15  ;;  %v989_v50 = vld [vmem:[#allocation5 + $0x118] sm:$0xff]   ;;  %v991_v52 = vld [vmem:[#allocation5 + $0x110] sm:$0xff]   ;;  %v992_v55 = vld [vmem:[#allocation5 + $0x148] sm:$0xff]  }
  0x36   :  { %867 = vmatprep.subr.bf16.mxu1 %v966_v18  ;;  %v66_v54 = vld [vmem:[#allocation2 + $0x28] sm:$0xff]  ;;  %v67_v57 = vld [vmem:[#allocation2 + $0x30] sm:$0xff]  ;;  %v993_v59 = vld [vmem:[#allocation5 + $0x108] sm:$0xff]  }
  0x37   :  { %846 = vmatpush3.bf16.msra.mxu0 %v965_v17  ;;  %v73_v56 = vpack.c.bf16 %v66_v54, %v66_v54  ;;  %v74_v58 = vpack.c.bf16 %v67_v57, %v67_v57  ;;  %v994_v60 = vld [vmem:[#allocation5 + $0x140] sm:$0xff]   ;;  %v65_v62 = vld [vmem:[#allocation2 + $0x20] sm:$0xff]  ;;  %v998_v1 = vld [vmem:[#allocation7 + $0x30] sm:$0xff]  }
  0x38   :  { %847 = vmatprep.subr.bf16.mxu0 %v968_v20  ;;  %v995_v61 = vld [vmem:[#allocation5 + $0x100] sm:$0xff]   ;;  %v72_v63 = vpack.c.bf16 %v65_v62, %v65_v62  ;;  %v999_v2 = vld [vmem:[#allocation7 + $0x28] sm:$0xff]   ;;  %v1000_v3 = vld [vmem:[#allocation7 + $0x20] sm:$0xff]  }
  0x39   :  { %868 = vmatpush3.bf16.msra.mxu1 %v967_v19  ;;  %v997_v0 = vld [vmem:[#allocation7 + $0x38] sm:$0xff]   ;;  %v1002_v5 = vld [vmem:[#allocation7 + $0x10] sm:$0xff]   ;;  %v1003_v6 = vld [vmem:[#allocation7 + $0x8] sm:$0xff]  }
  0x3a   :  { %869 = vmatprep.subr.bf16.mxu1 %v970_v22  ;;  %v1001_v4 = vld [vmem:[#allocation7 + $0x18] sm:$0xff]   ;;  %v1004_v7 = vld [vmem:[#allocation7] sm:$0xff]  }
  0x3b   :  { %848 = vmatpush3.bf16.msra.mxu0 %v969_v21  ;;  %v777_v21 = vld [vmem:[%s1166_s2] ss:$0 sm:$0xff]  ;;  %s1102_s2 = smov [#allocation8]  }
  0x3c   :  { %849 = vmatprep.subr.bf16.mxu0 %v972_v24  ;;  %v828_v34 = vld [vmem:[%s1168_s4] ss:$0 sm:$0xff]  ;;  %s767_s11 = sshll.u32 %s1102_s2, 4  ;;  %s768_s11 = int_to_ptr.vmem [resolvable:$true] %s767_s11 }
  0x3d   :  { %870 = vmatpush3.bf16.msra.mxu1 %v971_v23  ;;  %s1069_s4 = scalar_lea.vmem %s768_s11, 128  ;;  %p1074_p2 = scmp.lt.s32.totalorder %s768_s11, %s768_s11 }
  0x3e   :  { %871 = vmatprep.subr.bf16.mxu1 %v974_v26  ;;  %p1070_p1 = scmp.ne.s32.totalorder %s768_s11, %s1069_s4  ;;  %p1075_p3 = scmp.lt.s32.totalorder %s1069_s4, %s1069_s4 }
  0x3f   :  { %850 = vmatpush3.bf16.msra.mxu0 %v973_v25 }
  0x40   :  { %851 = vmatprep.subr.bf16.mxu0 %v976_v28  ;;  %p1076_p4 = por %p1075_p3, %p1074_p2 }
  0x41   :  { %872 = vmatpush3.bf16.msra.mxu1 %v975_v27 }
  0x42   :  { %873 = vmatprep.subr.bf16.mxu1 %v978_v30  ;;  %p1077_p5 = pnand %p1076_p4, %p1070_p1 }
  0x43   :  { %852 = vmatpush3.bf16.msra.mxu0 %v977_v29 }
  0x44   :  { %881 = vmatprep.subr.bf16.mxu0 %v980_v36 }
  0x45   :  { %874 = vmatpush3.bf16.msra.mxu1 %v979_v33 }
  0x46   :  { %511 = vmatmul.mubr.bf16.vlgmr.msra.gmra.mxu0 %v68_v35  ;;  %914 = vmatprep.subr.bf16.mxu1 %v1100_v44 }
  0x47   :  { %882 = vmatpush3.bf16.msra.mxu0 %v981_v39  ;;  %590 = vmatprep.mubr.bf16.mxu0 %v73_v56 }
  0x48   :  { %551 = vmatmul.mubr.bf16.vlgmr.msra.gmra.mxu1 %v70_v41  ;;  %883 = vmatprep.subr.bf16.mxu0 %v982_v42 }
  0x49   :  { %916 = vmatprep.mubr.msk.bf16.mxu1 %vm1101_vm0, %v1100_v44  ;;  %915 = vmatpush3.bf16.msra.mxu1 %v996_v53 }
  0x4a   :  { %920 = vmatprep.subr.bf16.mxu1 %v1100_v44 }
  0x4b   :  { %884 = vmatpush3.bf16.msra.mxu0 %v983_v43 }
  0x4c   :  { %885 = vmatprep.subr.bf16.mxu0 %v984_v45 }
  0x4f   :  { %886 = vmatpush3.bf16.msra.mxu0 %v985_v46 }
  0x50   :  { %887 = vmatprep.subr.bf16.mxu0 %v986_v47  ;;  %917 = vmatmul.mubr.msk.bf16.vlgmr.msra.gmra.mxu1 %vm474_vm1, %v74_v58 }
  0x51   :  { %936 = vmatprep.mubr.msk.bf16.mxu1 %vm1101_vm0, %v1100_v44  ;;  %921 = vmatpush3.bf16.msra.mxu1 %v997_v0 }
  0x52   :  { %922 = vmatprep.subr.bf16.mxu1 %v1100_v44 }
  0x53   :  { %888 = vmatpush3.bf16.msra.mxu0 %v987_v48 }
  0x54   :  { %889 = vmatprep.subr.bf16.mxu0 %v988_v49 }
  0x55   :  { %923 = vmatpush3.bf16.msra.mxu1 %v998_v1 }
  0x56   :  { %924 = vmatprep.subr.bf16.mxu1 %v1100_v44 }
  0x57   :  { %890 = vmatpush3.bf16.msra.mxu0 %v989_v50 }
  0x58   :  { %891 = vmatprep.subr.bf16.mxu0 %v990_v51 }
  0x59   :  { %925 = vmatpush3.bf16.msra.mxu1 %v999_v2 }
  0x5a   :  { %926 = vmatprep.subr.bf16.mxu1 %v1100_v44 }
  0x5b   :  { %892 = vmatpush3.bf16.msra.mxu0 %v991_v52 }
  0x5c   :  { %893 = vmatprep.subr.bf16.mxu0 %v992_v55 }
  0x5d   :  { %927 = vmatpush3.bf16.msra.mxu1 %v1000_v3 }
  0x5e   :  { %928 = vmatprep.subr.bf16.mxu1 %v1100_v44 }
  0x5f   :  { %894 = vmatpush3.bf16.msra.mxu0 %v993_v59 }
  0x60   :  { %895 = vmatprep.subr.bf16.mxu0 %v994_v60 }
  0x61   :  { %929 = vmatpush3.bf16.msra.mxu1 %v1001_v4 }
  0x62   :  { %930 = vmatprep.subr.bf16.mxu1 %v1100_v44 }
  0x63   :  { %896 = vmatpush3.bf16.msra.mxu0 %v995_v61 }
  0x65   :  { %931 = vmatpush3.bf16.msra.mxu1 %v1002_v5 }
  0x66   :  { %591 = vmatmul.mubr.bf16.vlgmr.msra.gmra.mxu0 %v72_v63  ;;  %932 = vmatprep.subr.bf16.mxu1 %v1100_v44 }
  0x69   :  { %933 = vmatpush3.bf16.msra.mxu1 %v1003_v6 }
  0x6a   :  { %934 = vmatprep.subr.bf16.mxu1 %v1100_v44 }
  0x6d   :  { %935 = vmatpush3.bf16.msra.mxu1 %v1004_v7 }
 0x106   :  { %v853_v8 = vpop.f32.mrf.mxu0 }
 0x108   :  { %v854_v9 = vpop.f32.mrf.mxu0  ;;  %v875_v10 = vpop.f32.mrf.mxu1 }
 0x109   :  { %v855_v20 = vadd.f32 %v854_v9, %v853_v8 }
 0x10a   :  { %v856_v11 = vpop.f32.mrf.mxu0  ;;  %v876_v12 = vpop.f32.mrf.mxu1 }
 0x10b   :  { %v513_v22 = vadd.f32 %v855_v20, %v777_v21  ;;  %v877_v23 = vadd.f32 %v876_v12, %v875_v10 }
 0x10c   :  { %v857_v13 = vpop.f32.mrf.mxu0  ;;  %v878_v14 = vpop.f32.mrf.mxu1 }
 0x10d   :  { %v553_v26 = vadd.f32 %v877_v23, %v513_v22 }
 0x10e   :  { %v879_v15 = vpop.f32.mrf.mxu1 }
 0x110   :  { %v632_v16 = vpop.f32.mrf.mxu1 }
 0x112   :  { %v918_v17 = vpop.f32.mrf.mxu1 }
 0x114   :  { %v635_v18 = vpop.f32.mrf.mxu1 }
 0x116   :  { %v919_v19 = vpop.f32.mrf.mxu1 }
 0x126   :  { %v897_v24 = vpop.f32.mrf.mxu0 }
 0x128   :  { %v898_v25 = vpop.f32.mrf.mxu0 }
 0x129   :  { %v899_v27 = vadd.f32 %v898_v25, %v897_v24 }
 0x12a   :  { %v900_v28 = vpop.f32.mrf.mxu0 }
 0x12b   :  { %v593_v29 = vadd.f32 %v899_v27, %v553_v26 }
 0x12c   :  { %v901_v30 = vpop.f32.mrf.mxu0 }
 0x12d   :  { %v633_v31 = vadd.f32 %v632_v16, %v593_v29 }
 0x12f   :  { %v638_v32 = vmax.f32 %v633_v31, 0.0 }
 0x131   :  { %v639_v33 = vpack.c.bf16 %v638_v32, %v638_v32 }
 0x133   :  { %937 = vmatmul.mubr.bf16.vlgmr.msra.gmra.mxu1 %v639_v33 }
 0x1f3   :  { %v745_v35 = vpop.f32.mrf.mxu1 }
 0x1f4   :  { %v746_v36 = vadd.f32 %v828_v34, %v745_v35 }
 0x1f5   :  { %v938_v37 = vpop.f32.mrf.mxu1 }
 0x1f6   :  { %751 = vmax.xlane.f32.xlu0 %v746_v36 }
 0x1f7   :  { %v748_v38 = vpop.f32.mrf.mxu1 }
 0x1f9   :  { %v939_v39 = vpop.f32.mrf.mxu1 }
 0x27f   :  { %v752_v40 = vpop.xlane.xlu0 %751 }
 0x280   :  { %v753_v41 = vsub.f32 %v746_v36, %v752_v40 }
 0x282   :  { %v754_v42 = vmul.f32 1.442695, %v753_v41 }
 0x284   :  { %1005 = vpow2.f32 %v754_v42 }
 0x291   :  { %v1006_v43 = vpop.eup %1005 }
 0x292   :  { %756 = vadd.xlane.f32.xlu0 %v1006_v43 }
 0x31b   :  { %v757_v44 = vpop.xlane.xlu0 %756 }
 0x31c   :  { %1007 = vrcp.f32 %v757_v44 }
 0x329   :  { %v1008_v45 = vpop.eup %1007 }
 0x32a   :  { %v759_v46 = vmul.f32 %v1008_v45, %v1006_v43 }
 0x32c   :  { %760 = vst [vmem:[#allocation8] sm:$0xff] %v759_v46 }
 0x32d   :  { %1080 = shalt.err (!%p1077_p5)
}
 0x32e   :  { %770 = dma.vmem_to_hbm [thread:$0]  %s768_s11, 128, %s1169_s5, [#allocation4]  }
 0x32f   :  { %1093 = dma.done.wait [#allocation4], 128  }
 0x330   :  { %1094 = vsyncadd [#allocation4], 4294967168 }
 0x331   :  { %774 = vsyncpa [#allocation3], 1 }
 0x332   :  { %775 = vsyncpa [#allocation6], 1 }
 0x333   :  { %776 = vsyncpa [#allocation4], 1 }

</bundles_post_ra>
